<compile_context>
chip_gen: v7x
topology: tpu7x:2x2x1
jax: 0.10.0
libtpu: 0.0.40
codegen_flags: <defaults>
</compile_context>

<pallas_src>
import jax
import jax.numpy as jnp
from jax.experimental import pallas as pl
from jax.experimental.pallas import tpu as pltpu


def critic_kernel(state_ref, action_ref, w1s_ref, w1a_ref, b1_ref,
                  w2_ref, b2_ref, wq_ref, bq_ref, q_ref):
    # Activations cast to bf16 at the MXU inputs; accumulate in f32.
    s = state_ref[...].astype(jnp.bfloat16)
    a = action_ref[...].astype(jnp.bfloat16)

    # Fused concat:  concat([s, a]) @ W1  ==  s @ W1[:d] + a @ W1[d:]
    h1 = (jnp.dot(s, w1s_ref[...], preferred_element_type=jnp.float32)
          + jnp.dot(a, w1a_ref[...], preferred_element_type=jnp.float32)
          + b1_ref[...])
    h1 = jnp.maximum(h1, 0.0)

    h2 = jnp.dot(h1.astype(jnp.bfloat16), w2_ref[...],
                 preferred_element_type=jnp.float32) + b2_ref[...]
    h2 = jnp.maximum(h2, 0.0)

    # Lane-dense Q head:  (1, fc2) contracted with (block_b, fc2) on the
    # feature axis -> (1, block_b) row (same pattern as q @ k^T in attention).
    q = jax.lax.dot_general(
        wq_ref[...], h2.astype(jnp.bfloat16),
        dimension_numbers=(((1,), (1,)), ((), ())),
        preferred_element_type=jnp.float32)
    q = q + bq_ref[0, 0]                       # bq scalar from SMEM
    q_ref[...] = q[None].astype(q_ref.dtype)   # (1, 1, block_b)


def _round_up(x, m):
    return (x + m - 1) // m * m


def _num_tensorcores_per_chip():
    """2 on v7x (2 TCs/chip), else 1.  Heuristic; safe default is 1."""
    try:
        kind = jax.devices()[0].device_kind.lower()
    except Exception:
        return 1
    return 2 if ("v7" in kind or "7x" in kind) else 1


def _batch_blocking(B):
    # Per-grid-step overhead (~0.35 us) dwarfs compute here, so use the
    # biggest blocks we can: grid length 1 on single-TC chips, >= 2 on v7x so
    # both TensorCores get work.  VMEM is nowhere near a constraint (f32
    # h1/h2 at block_b=2048 are ~2 MiB each).
    max_block = 2048
    num_blocks = max(1, pl.cdiv(B, max_block))
    if _num_tensorcores_per_chip() > 1 and B >= 16:
        num_blocks = max(num_blocks, 2)
    block_b = _round_up(pl.cdiv(B, num_blocks), 8)
    return num_blocks, block_b


def critic_forward(state, action, params):
    """state: (B, input_dims), action: (B, n_actions) -> q: (B, 1)."""
    w1s, w1a, b1, w2, b2, wq, bq = params
    B, input_dims = state.shape
    n_actions = action.shape[1]

    num_blocks, block_b = _batch_blocking(B)
    padded_b = num_blocks * block_b
    if padded_b != B:
        pad = padded_b - B
        state = jnp.pad(state, ((0, pad), (0, 0)))
        action = jnp.pad(action, ((0, pad), (0, 0)))

    def full2(shape):
        return pl.BlockSpec(shape, lambda i: (0, 0))

    q_rows = pl.pallas_call(
        critic_kernel,
        out_shape=jax.ShapeDtypeStruct((num_blocks, 1, block_b), jnp.float32),
        grid=(num_blocks,),
        in_specs=[
            pl.BlockSpec((block_b, input_dims), lambda i: (i, 0)),   # state
            pl.BlockSpec((block_b, n_actions), lambda i: (i, 0)),    # action
            full2(w1s.shape),                                        # W1[:d]  (bf16)
            full2(w1a.shape),                                        # W1[d:]  (bf16)
            full2(b1.shape),                                         # b1      (f32)
            full2(w2.shape),                                         # W2      (bf16)
            full2(b2.shape),                                         # b2      (f32)
            full2(wq.shape),                                         # Wq row  (bf16)
            pl.BlockSpec(memory_space=pltpu.MemorySpace.SMEM),       # bq scalar
        ],
        out_specs=pl.BlockSpec((1, 1, block_b), lambda i: (i, 0, 0)),
        compiler_params=pltpu.CompilerParams(
            dimension_semantics=("parallel",)),
    )(state, action, w1s, w1a, b1, w2, b2, wq, bq)

    # (num_blocks, 1, block_b) row-major flatten == batch order of the blocks.
    return q_rows.reshape(-1)[:B].reshape(B, 1)


def init_params(key, input_dims, n_actions, fc1_dims=256, fc2_dims=256):
    """PyTorch-style Linear init: U(-1/sqrt(fan_in), 1/sqrt(fan_in)).

    Returns (kernel_params, f32_reference_weights).  Kernel weights are stored
    as (in_features, out_features); W1/W2/Wq in bf16 (MXU operands), biases in
    f32, bq as a (1, 1) f32 scalar for SMEM.  The f32 reference weights let
    callers validate the bf16-weight deviation against the true f32 module.
    """
    def linear(k, fan_in, fan_out):
        kw, kb = jax.random.split(k)
        bound = 1.0 / (float(fan_in) ** 0.5)
        w = jax.random.uniform(kw, (fan_in, fan_out), jnp.float32, -bound, bound)
        b = jax.random.uniform(kb, (1, fan_out), jnp.float32, -bound, bound)
        return w, b

    k1, k2, k3 = jax.random.split(key, 3)
    in_dim = input_dims + n_actions
    w1, b1 = linear(k1, in_dim, fc1_dims)
    w2, b2 = linear(k2, fc1_dims, fc2_dims)
    wq, bq = linear(k3, fc2_dims, 1)

    # Pre-split W1 along its input axis so the kernel never needs the concat.
    w1s = w1[:input_dims].astype(jnp.bfloat16)     # (input_dims, fc1)
    w1a = w1[input_dims:].astype(jnp.bfloat16)     # (n_actions, fc1)
    w2_b = w2.astype(jnp.bfloat16)                 # (fc1, fc2)
    wq_row = wq.T.astype(jnp.bfloat16)             # (1, fc2) head row
    bq_s = bq.reshape(1, 1)                        # (1, 1) f32 scalar for SMEM

    params = (w1s, w1a, b1, w2_b, b2, wq_row, bq_s)
    ref_f32 = (w1, b1, w2, b2, wq, bq)             # true f32 module weights
    return params, ref_f32


if __name__ == "__main__":
    key = jax.random.PRNGKey(0)
    k_params, k_state, k_action = jax.random.split(key, 3)

    batch = 8
    input_dims = 8     # matches CriticNetwork(input_dims=[8], ...)
    n_actions = 2

    params, ref_f32 = init_params(k_params, input_dims, n_actions)
    state = jax.random.normal(k_state, (batch, input_dims), jnp.float32)
    action = jax.random.normal(k_action, (batch, n_actions), jnp.float32)

    q = critic_forward(state, action, params)
    q = jax.block_until_ready(q)
    assert q.shape == (batch, 1)

    # (1) Tight check vs a pure-JAX reference of the same bf16-at-MXU math.
    w1s, w1a, b1, w2, b2, wq, bq = params
    sb = state.astype(jnp.bfloat16)
    ab = action.astype(jnp.bfloat16)
    h1 = jnp.maximum(
        jnp.dot(sb, w1s, preferred_element_type=jnp.float32)
        + jnp.dot(ab, w1a, preferred_element_type=jnp.float32) + b1, 0.0)
    h2 = jnp.maximum(
        jnp.dot(h1.astype(jnp.bfloat16), w2,
                preferred_element_type=jnp.float32) + b2, 0.0)
    q_match = jnp.dot(h2.astype(jnp.bfloat16), wq.T,
                      preferred_element_type=jnp.float32) + bq[0, 0]
    assert jnp.allclose(q, q_match, atol=2e-3, rtol=2e-3), (
        float(jnp.max(jnp.abs(q - q_match))))

    # (2) Loose check vs the true f32 PyTorch-equivalent forward, documenting
    #     the (small) bf16-weight deviation flagged in the review.
    w1f, b1f, w2f, b2f, wqf, bqf = ref_f32
    hp = jax.lax.Precision.HIGHEST
    x = jnp.concatenate([state, action], axis=1)
    h1f = jnp.maximum(jnp.dot(x, w1f, precision=hp) + b1f, 0.0)
    h2f = jnp.maximum(jnp.dot(h1f, w2f, precision=hp) + b2f, 0.0)
    q_f32 = jnp.dot(h2f, wqf, precision=hp) + bqf
    assert jnp.allclose(q, q_f32, atol=1e-2, rtol=1e-2), (
        float(jnp.max(jnp.abs(q - q_f32))))

    print("KERNEL_OK")
</pallas_src>

<mosaic_0001>
module attributes {stable_mosaic.version = 11 : i64} {
  func.func @critic_kernel(%arg0: i32, %arg1: memref<8x8xf32, #tpu.memory_space<vmem>>, %arg2: memref<8x2xf32, #tpu.memory_space<vmem>>, %arg3: memref<8x256xbf16, #tpu.memory_space<vmem>>, %arg4: memref<2x256xbf16, #tpu.memory_space<vmem>>, %arg5: memref<1x256xf32, #tpu.memory_space<vmem>>, %arg6: memref<256x256xbf16, #tpu.memory_space<vmem>>, %arg7: memref<1x256xf32, #tpu.memory_space<vmem>>, %arg8: memref<1x256xbf16, #tpu.memory_space<vmem>>, %arg9: memref<1x1xf32, #tpu.memory_space<smem>>, %arg10: memref<1x1x8xf32, #tpu.memory_space<vmem>>) attributes {dimension_semantics = [#tpu.dimension_semantics<parallel>], iteration_bounds = array<i64: 1>, scalar_prefetch = 0 : i64, scratch_operands = 0 : i64, tpu.core_type = #tpu.core_type<tc>, window_params = [{transform_indices = @transform_0, window_bounds = array<i64: 8, 8>}, {transform_indices = @transform_1, window_bounds = array<i64: 8, 2>}, {pipeline_mode = #tpu.pipeline_mode<synchronous>, transform_indices = @transform_2, window_bounds = array<i64: 8, 256>}, {pipeline_mode = #tpu.pipeline_mode<synchronous>, transform_indices = @transform_3, window_bounds = array<i64: 2, 256>}, {pipeline_mode = #tpu.pipeline_mode<synchronous>, transform_indices = @transform_4, window_bounds = array<i64: 1, 256>}, {pipeline_mode = #tpu.pipeline_mode<synchronous>, transform_indices = @transform_5, window_bounds = array<i64: 256, 256>}, {pipeline_mode = #tpu.pipeline_mode<synchronous>, transform_indices = @transform_6, window_bounds = array<i64: 1, 256>}, {pipeline_mode = #tpu.pipeline_mode<synchronous>, transform_indices = @transform_7, window_bounds = array<i64: 1, 256>}, {transform_indices = @transform_8, window_bounds = array<i64: 1, 1>}, {transform_indices = @transform_9, window_bounds = array<i64: 1, 1, 8>}]} {
    %c0 = arith.constant 0 : index
    %c0_0 = arith.constant 0 : index
    %0 = vector.load %arg1[%c0, %c0_0] : memref<8x8xf32, #tpu.memory_space<vmem>>, vector<8x8xf32>
    %1 = arith.truncf %0 : vector<8x8xf32> to vector<8x8xbf16>
    %c0_1 = arith.constant 0 : index
    %c0_2 = arith.constant 0 : index
    %2 = vector.load %arg2[%c0_1, %c0_2] : memref<8x2xf32, #tpu.memory_space<vmem>>, vector<8x2xf32>
    %3 = arith.truncf %2 : vector<8x2xf32> to vector<8x2xbf16>
    %c0_3 = arith.constant 0 : index
    %c0_4 = arith.constant 0 : index
    %4 = vector.load %arg3[%c0_3, %c0_4] : memref<8x256xbf16, #tpu.memory_space<vmem>>, vector<8x256xbf16>
    %cst = arith.constant dense<0.000000e+00> : vector<8x256xf32>
    %5 = tpu.matmul %1, %4, %cst {dimension_numbers = #tpu.dot_dimension_numbers<[1], [0], [0], [1], [0, 0, 1, 1], [], []>} : vector<8x8xbf16>, vector<8x256xbf16>, vector<8x256xf32> -> vector<8x256xf32>
    %c0_5 = arith.constant 0 : index
    %c0_6 = arith.constant 0 : index
    %6 = vector.load %arg4[%c0_5, %c0_6] : memref<2x256xbf16, #tpu.memory_space<vmem>>, vector<2x256xbf16>
    %cst_7 = arith.constant dense<0.000000e+00> : vector<8x256xf32>
    %7 = tpu.matmul %3, %6, %cst_7 {dimension_numbers = #tpu.dot_dimension_numbers<[1], [0], [0], [1], [0, 0, 1, 1], [], []>} : vector<8x2xbf16>, vector<2x256xbf16>, vector<8x256xf32> -> vector<8x256xf32>
    %8 = arith.addf %5, %7 : vector<8x256xf32>
    %c0_8 = arith.constant 0 : index
    %c0_9 = arith.constant 0 : index
    %9 = vector.load %arg5[%c0_8, %c0_9] : memref<1x256xf32, #tpu.memory_space<vmem>>, vector<1x256xf32>
    %10 = vector.broadcast %9 : vector<1x256xf32> to vector<8x256xf32>
    %11 = arith.addf %8, %10 : vector<8x256xf32>
    %cst_10 = arith.constant 0.000000e+00 : f32
    %12 = vector.broadcast %cst_10 : f32 to vector<8x256xf32>
    %13 = arith.maximumf %11, %12 : vector<8x256xf32>
    %14 = arith.truncf %13 : vector<8x256xf32> to vector<8x256xbf16>
    %c0_11 = arith.constant 0 : index
    %c0_12 = arith.constant 0 : index
    %15 = vector.load %arg6[%c0_11, %c0_12] : memref<256x256xbf16, #tpu.memory_space<vmem>>, vector<256x256xbf16>
    %cst_13 = arith.constant dense<0.000000e+00> : vector<8x256xf32>
    %16 = tpu.matmul %14, %15, %cst_13 {dimension_numbers = #tpu.dot_dimension_numbers<[1], [0], [0], [1], [0, 0, 1, 1], [], []>} : vector<8x256xbf16>, vector<256x256xbf16>, vector<8x256xf32> -> vector<8x256xf32>
    %c0_14 = arith.constant 0 : index
    %c0_15 = arith.constant 0 : index
    %17 = vector.load %arg7[%c0_14, %c0_15] : memref<1x256xf32, #tpu.memory_space<vmem>>, vector<1x256xf32>
    %18 = vector.broadcast %17 : vector<1x256xf32> to vector<8x256xf32>
    %19 = arith.addf %16, %18 : vector<8x256xf32>
    %cst_16 = arith.constant 0.000000e+00 : f32
    %20 = vector.broadcast %cst_16 : f32 to vector<8x256xf32>
    %21 = arith.maximumf %19, %20 : vector<8x256xf32>
    %c0_17 = arith.constant 0 : index
    %c0_18 = arith.constant 0 : index
    %22 = vector.load %arg8[%c0_17, %c0_18] : memref<1x256xbf16, #tpu.memory_space<vmem>>, vector<1x256xbf16>
    %23 = arith.truncf %21 : vector<8x256xf32> to vector<8x256xbf16>
    %cst_19 = arith.constant dense<0.000000e+00> : vector<1x8xf32>
    %24 = tpu.matmul %22, %23, %cst_19 {dimension_numbers = #tpu.dot_dimension_numbers<[1], [1], [0], [0], [0, 0, 1, 0], [], []>} : vector<1x256xbf16>, vector<8x256xbf16>, vector<1x8xf32> -> vector<1x8xf32>
    %c0_20 = arith.constant 0 : index
    %c0_21 = arith.constant 0 : index
    %25 = memref.load %arg9[%c0_20, %c0_21] : memref<1x1xf32, #tpu.memory_space<smem>>
    %26 = vector.broadcast %25 : f32 to vector<1x8xf32>
    %27 = arith.addf %24, %26 : vector<1x8xf32>
    %28 = vector.shape_cast %27 : vector<1x8xf32> to vector<1x1x8xf32>
    %c0_22 = arith.constant 0 : index
    %c0_23 = arith.constant 0 : index
    %c0_24 = arith.constant 0 : index
    %29 = vector.load %arg10[%c0_22, %c0_23, %c0_24] : memref<1x1x8xf32, #tpu.memory_space<vmem>>, vector<1x1x8xf32>
    tpu.vector_store %arg10[%c0_22, %c0_23, %c0_24], %28 {strides = array<i32>} : memref<1x1x8xf32, #tpu.memory_space<vmem>>, vector<1x1x8xf32>,
    return
  }
  func.func @transform_0(%arg0: i32) -> (i32, i32) {
    %c0_i32 = arith.constant 0 : i32
    %c0_i32_0 = arith.constant 0 : i32
    return %arg0, %c0_i32 : i32, i32
  }
  func.func @transform_1(%arg0: i32) -> (i32, i32) {
    %c0_i32 = arith.constant 0 : i32
    %c0_i32_0 = arith.constant 0 : i32
    return %arg0, %c0_i32 : i32, i32
  }
  func.func @transform_2(%arg0: i32) -> (i32, i32) {
    %c0_i32 = arith.constant 0 : i32
    %c0_i32_0 = arith.constant 0 : i32
    %c0_i32_1 = arith.constant 0 : i32
    return %c0_i32, %c0_i32_0 : i32, i32
  }
  func.func @transform_3(%arg0: i32) -> (i32, i32) {
    %c0_i32 = arith.constant 0 : i32
    %c0_i32_0 = arith.constant 0 : i32
    %c0_i32_1 = arith.constant 0 : i32
    return %c0_i32, %c0_i32_0 : i32, i32
  }
  func.func @transform_4(%arg0: i32) -> (i32, i32) {
    %c0_i32 = arith.constant 0 : i32
    %c0_i32_0 = arith.constant 0 : i32
    %c0_i32_1 = arith.constant 0 : i32
    return %c0_i32, %c0_i32_0 : i32, i32
  }
  func.func @transform_5(%arg0: i32) -> (i32, i32) {
    %c0_i32 = arith.constant 0 : i32
    %c0_i32_0 = arith.constant 0 : i32
    %c0_i32_1 = arith.constant 0 : i32
    return %c0_i32, %c0_i32_0 : i32, i32
  }
  func.func @transform_6(%arg0: i32) -> (i32, i32) {
    %c0_i32 = arith.constant 0 : i32
    %c0_i32_0 = arith.constant 0 : i32
    %c0_i32_1 = arith.constant 0 : i32
    return %c0_i32, %c0_i32_0 : i32, i32
  }
  func.func @transform_7(%arg0: i32) -> (i32, i32) {
    %c0_i32 = arith.constant 0 : i32
    %c0_i32_0 = arith.constant 0 : i32
    %c0_i32_1 = arith.constant 0 : i32
    return %c0_i32, %c0_i32_0 : i32, i32
  }
  func.func @transform_8(%arg0: i32) -> (i32, i32) {
    %c0_i32 = arith.constant 0 : i32
    %c0_i32_0 = arith.constant 0 : i32
    %c0_i32_1 = arith.constant 0 : i32
    return %c0_i32, %c0_i32_0 : i32, i32
  }
  func.func @transform_9(%arg0: i32) -> (i32, i32, i32) {
    %c0_i32 = arith.constant 0 : i32
    %c0_i32_0 = arith.constant 0 : i32
    %c0_i32_1 = arith.constant 0 : i32
    return %arg0, %c0_i32, %c0_i32_0 : i32, i32, i32
  }
}

</mosaic_0001>

<bundles_post_ra>
// kernel: tpu_custom_call.1
= control target key start
LH: loop header
LB: loop body
LE: loop exit
PB: predicated region body
PF: predicated region fallthrough
CT: control target
= control target key end

     0   :  { %15 = vsyncpa [#allocation4], 0  ;;  %s798_s0 = inlined_call_operand.vmem [shape: f32[8,8], index: 0, kind: input, shape index: {}]   ;;  %s799_s1 = inlined_call_operand.vmem [shape: f32[8,2], index: 1, kind: input, shape index: {}]   ;;  %s800_s2 = inlined_call_operand.vmem [shape: bf16[8,256], index: 2, kind: input, shape index: {}]   ;;  %s801_s3 = inlined_call_operand.vmem [shape: bf16[2,256], index: 3, kind: input, shape index: {}]   ;;  %s802_s4 = inlined_call_operand.vmem [shape: f32[1,256], index: 4, kind: input, shape index: {}]   ;;  %s803_s5 = inlined_call_operand.hbm [shape: bf16[256,256], index: 5, kind: input, shape index: {}]   ;;  %s804_s6 = inlined_call_operand.vmem [shape: f32[1,256], index: 6, kind: input, shape index: {}]   ;;  %s805_s7 = inlined_call_operand.vmem [shape: bf16[1,256], index: 7, kind: input, shape index: {}]   ;;  %s806_s8 = inlined_call_operand.<no memory space> [shape: f32[1,1], index: 8, kind: input, shape index: {}]   ;;  %s807_s9 = inlined_call_operand.hbm [shape: f32[1,1,8], index: 9, kind: output, shape index: {}]  }
   0x1   :  { %16 = vsyncpa [#allocation5], 0  ;;  %s683_s30 = smov [#allocation3]   ;;  %s635_s13 = scalar_lea.hbm %s803_s5, 4096 }
   0x2   :  { %s32_s10 = sshll.u32 %s683_s30, 4  ;;  %p636_p0 = scmp.ne.s32.totalorder %s803_s5, %s635_s13  ;;  %s33_s10 = int_to_ptr.vmem [resolvable:$true] %s32_s10 }
   0x3   :  { %p639_p1 = scmp.lt.u32.totalorder %s635_s13, %s803_s5 }
   0x5   :  { %p641_p2 = pnand %p639_p1, %p636_p0 }
   0x7   :  { %644 = shalt.err (!%p641_p2)
}
   0x8   :  { %s645_s18 = scalar_lea.vmem %s33_s10, 4096  ;;  %p650_p4 = scmp.lt.s32.totalorder %s33_s10, %s33_s10 }
   0x9   :  { %p646_p3 = scmp.ne.s32.totalorder %s33_s10, %s645_s18  ;;  %p651_p5 = scmp.lt.s32.totalorder %s645_s18, %s645_s18 }
   0xb   :  { %p652_p6 = por %p651_p5, %p650_p4 }
   0xd   :  { %p653_p7 = pnand %p652_p6, %p646_p3 }
   0xf   :  { %656 = shalt.err (!%p653_p7)
}
  0x10   :  { %s684_s19 = smov 128   ;;  %s685_s20 = smov 8  }
  0x11   :  { %38 = dma.hbm_to_vmem [thread:$0]  %s803_s5, 4096, %s33_s10, [#allocation4], %s684_s19, %s684_s19, %s685_s20  }
  0x12   :  { %679 = dma.done.wait [#allocation4], 4096  }
  0x13   :  { %680 = vsyncadd [#allocation4], 4294963200  ;;  %v67_v0 = vlaneseq  ;;  %v686_v1 = vmov 1966171168   ;;  %v687_v3 = vmov 0   ;;  %vm82_vm0 = vcmask 1040384  }
  0x14   :  { %v65_v2 = vunpack.c.l.s4 %v686_v1  ;;  %121 = vmatprep.mubr.bf16.mxu1 %v687_v3  ;;  %v539_v7 = vld.sshfl [vmem:[%s801_s3] sm:$0x11 pattern:$0x75316420]  ;;  %v587_v12 = vld [vmem:[#allocation3 + $0x4] ss:$8 sps:$4 sm:$0xff]  }
  0x15   :  { %v751_v4 = vshrl.u32 %v67_v0, 7  ;;  %v53_v8 = vld [vmem:[%s800_s2] sm:$0xff]  ;;  %v63_v9 = vcombine.high %v539_v7, %v539_v7  ;;  %v590_v18 = vld [vmem:[#allocation3 + $0x14] ss:$8 sps:$4 sm:$0xff]   ;;  %vm139_vm1 = vcmask 1043456   ;;  %409 = vmatprep.subr.bf16.mxu0 %v587_v12  ;;  %vm78_vm2 = vcmask 15360  }
  0x16   :  { %v66_v5 = vunpack.c.0.s8 %v65_v2  ;;  %v51_v11 = vld [vmem:[%s799_s1] sm:$0xff]  ;;  %v543_v16 = vcombine.high %v53_v8, %v53_v8  ;;  %v542_v17 = vcombine.low %v53_v8, %v53_v8  ;;  %v592_v20 = vld [vmem:[#allocation3 + $0x10] ss:$8 sps:$4 sm:$0xff]   ;;  %v596_v25 = vld [vmem:[#allocation3 + $0x34] ss:$8 sps:$4 sm:$0xff]   ;;  %vm135_vm3 = vcmask 64512  }
  0x17   :  { %v589_v13 = vld [vmem:[#allocation3] ss:$8 sps:$4 sm:$0xff]   ;;  %v52_v19 = vpack.c.bf16 %v51_v11, %v51_v11  ;;  %v593_v22 = vld [vmem:[#allocation3 + $0x24] ss:$8 sps:$4 sm:$0xff]   ;;  %v598_v27 = vld [vmem:[#allocation3 + $0x30] ss:$8 sps:$4 sm:$0xff]  }
  0x18   :  { %v754_v6 = vsub.s32 %v66_v5, %v751_v4  ;;  %410 = vmatpush1.bf16.msra.mxu0 %v589_v13  ;;  %v141_v21 = vsel %vm139_vm1, %v542_v17, 0  ;;  %v595_v23 = vld [vmem:[#allocation3 + $0x20] ss:$8 sps:$4 sm:$0xff]   ;;  %v599_v28 = vld [vmem:[#allocation3 + $0x44] ss:$8 sps:$4 sm:$0xff]   ;;  %v191_v56 = vsub.s32 0, %v751_v4 }
  0x19   :  { %411 = vmatprep.subr.bf16.mxu0 %v590_v18  ;;  %v49_v24 = vld [vmem:[%s798_s0] sm:$0xff]  ;;  %v602_v30 = vld [vmem:[#allocation3 + $0x54] ss:$8 sps:$4 sm:$0xff]   ;;  %v604_v31 = vld [vmem:[#allocation3 + $0x50] ss:$8 sps:$4 sm:$0xff]   ;;  %v195_v58 = vsub.s32 1, %v751_v4 }
  0x1a   :  { %v70_v10 = vrot.slane %v539_v7, %v754_v6  ;;  %v77_v14 = vrot.slane %v63_v9, %v754_v6  ;;  %v50_v26 = vpack.c.bf16 %v49_v24, %v49_v24  ;;  %v601_v29 = vld [vmem:[#allocation3 + $0x40] ss:$8 sps:$4 sm:$0xff]   ;;  %v605_v32 = vld [vmem:[#allocation3 + $0x64] ss:$8 sps:$4 sm:$0xff]   ;;  %v608_v34 = vld [vmem:[#allocation3 + $0x74] ss:$8 sps:$4 sm:$0xff]  }
  0x1b   :  { %v607_v33 = vld [vmem:[#allocation3 + $0x60] ss:$8 sps:$4 sm:$0xff]   ;;  %v610_v35 = vld [vmem:[#allocation3 + $0x70] ss:$8 sps:$4 sm:$0xff]   ;;  %v611_v36 = vld [vmem:[#allocation3 + $0x84] ss:$8 sps:$4 sm:$0xff]  }
  0x1c   :  { %v84_v15 = vsel %vm82_vm0, %v70_v10, 0  ;;  %540 = vmatprep.subr.msk.bf16.mxu1 %vm82_vm0, %v77_v14  ;;  %412 = vmatpush1.bf16.msra.mxu0 %v592_v20  ;;  %v613_v37 = vld [vmem:[#allocation3 + $0x80] ss:$8 sps:$4 sm:$0xff]   ;;  %v614_v38 = vld [vmem:[#allocation3 + $0x94] ss:$8 sps:$4 sm:$0xff]   ;;  %vm522_vm4 = vcmask 57344  }
  0x1d   :  { %90 = vmatpush1.bf16.msra.mxu1 %v84_v15  ;;  %413 = vmatprep.subr.bf16.mxu0 %v593_v22  ;;  %v616_v39 = vld [vmem:[#allocation3 + $0x90] ss:$8 sps:$4 sm:$0xff]   ;;  %v617_v40 = vld [vmem:[#allocation3 + $0xa4] ss:$8 sps:$4 sm:$0xff]   ;;  %v619_v41 = vld [vmem:[#allocation3 + $0xa0] ss:$8 sps:$4 sm:$0xff]  }
  0x1e   :  { %544 = vmatprep.subr.msk.bf16.mxu1 %vm139_vm1, %v543_v16  ;;  %v620_v42 = vld [vmem:[#allocation3 + $0xb4] ss:$8 sps:$4 sm:$0xff]   ;;  %v622_v43 = vld [vmem:[#allocation3 + $0xb0] ss:$8 sps:$4 sm:$0xff]   ;;  %v623_v44 = vld [vmem:[#allocation3 + $0xc4] ss:$8 sps:$4 sm:$0xff]  }
  0x1f   :  { %v625_v45 = vld [vmem:[#allocation3 + $0xc0] ss:$8 sps:$4 sm:$0xff]   ;;  %v626_v46 = vld [vmem:[#allocation3 + $0xd4] ss:$8 sps:$4 sm:$0xff]   ;;  %v628_v47 = vld [vmem:[#allocation3 + $0xd0] ss:$8 sps:$4 sm:$0xff]  }
  0x20   :  { %541 = vmatmul.mubr.msk.bf16.vlgmr.msra.gmra.mrb[0].mxu1 %vm78_vm2, %v52_v19  ;;  %414 = vmatpush1.bf16.msra.mxu0 %v595_v23  ;;  %v629_v48 = vld [vmem:[#allocation3 + $0xe4] ss:$8 sps:$4 sm:$0xff]   ;;  %v631_v49 = vld [vmem:[#allocation3 + $0xe0] ss:$8 sps:$4 sm:$0xff]   ;;  %v632_v50 = vld [vmem:[#allocation3 + $0xf4] ss:$8 sps:$4 sm:$0xff]  }
  0x21   :  { %147 = vmatpush1.bf16.msra.mxu1 %v141_v21  ;;  %178 = vmatprep.mubr.bf16.mxu1 %v687_v3  ;;  %v634_v51 = vld [vmem:[#allocation3 + $0xf0] ss:$8 sps:$4 sm:$0xff]   ;;  %v187_v57 = vld [vmem:[%s802_s4] sm:$0x3] }
  0x22   :  { %415 = vmatprep.subr.bf16.mxu0 %v596_v25  ;;  %v192_v59 = vrot.slane %v187_v57, %v191_v56  ;;  %v196_v61 = vrot.slane %v187_v57, %v195_v58  ;;  %v578_v4 = vld.sshfl [vmem:[%s805_s7] sm:$0x11 pattern:$0x75316420] }
  0x23   :  { %v465_v11 = vcombine.high %v578_v4, %v578_v4  ;;  %v237_v13 = vld [vmem:[%s804_s6] sm:$0x3]  ;;  %s688_s6 = smov [#allocation6]  }
  0x24   :  { %416 = vmatpush1.bf16.msra.mxu0 %v598_v27  ;;  %v242_v14 = vrot.slane %v237_v13, %v191_v56  ;;  %v246_v15 = vrot.slane %v237_v13, %v195_v58  ;;  %v456_v27 = vstv %s806_s8  ;;  %s530_s11 = sshll.u32 %s688_s6, 4  ;;  %s531_s11 = int_to_ptr.vmem [resolvable:$true] %s530_s11 }
  0x25   :  { %417 = vmatprep.subr.bf16.mxu0 %v599_v28  ;;  %v479_v12 = vrot.slane %v465_v11, %v754_v6  ;;  %s657_s12 = scalar_lea.vmem %s531_s11, 16  ;;  %s661_s13 = scalar_lea.vmem %s531_s11, 32 }
  0x26   :  { %p658_p8 = scmp.ne.s32.totalorder %s531_s11, %s657_s12  ;;  %p662_p9 = scmp.lt.s32.totalorder %s531_s11, %s531_s11 }
  0x27   :  { %p663_p10 = scmp.lt.s32.totalorder %s661_s13, %s657_s12 }
  0x28   :  { %545 = vmatmul.mubr.msk.bf16.vlgmr.msra.gmra.mrb[4].mxu1 %vm135_vm3, %v50_v26  ;;  %418 = vmatpush1.bf16.msra.mxu0 %v601_v29  ;;  %v472_v26 = vrot.slane %v578_v4, %v754_v6 }
  0x29   :  { %419 = vmatprep.subr.bf16.mxu0 %v602_v30  ;;  %514 = vmatprep.mubr.bf16.mxu1 %v479_v12  ;;  %p664_p11 = por %p663_p10, %p662_p9 }
  0x2b   :  { %p665_p12 = pnand %p664_p11, %p658_p8 }
  0x2c   :  { %420 = vmatpush1.bf16.msra.mxu0 %v604_v31 }
  0x2d   :  { %421 = vmatprep.subr.bf16.mxu0 %v605_v32 }
  0x30   :  { %422 = vmatpush1.bf16.msra.mxu0 %v607_v33 }
  0x31   :  { %423 = vmatprep.subr.bf16.mxu0 %v608_v34 }
  0x34   :  { %424 = vmatpush1.bf16.msra.mxu0 %v610_v35 }
  0x35   :  { %425 = vmatprep.subr.bf16.mxu0 %v611_v36 }
  0x38   :  { %426 = vmatpush1.bf16.msra.mxu0 %v613_v37 }
  0x39   :  { %427 = vmatprep.subr.bf16.mxu0 %v614_v38 }
  0x3c   :  { %428 = vmatpush1.bf16.msra.mxu0 %v616_v39 }
  0x3d   :  { %429 = vmatprep.subr.bf16.mxu0 %v617_v40 }
  0x40   :  { %430 = vmatpush1.bf16.msra.mxu0 %v619_v41 }
  0x41   :  { %431 = vmatprep.subr.bf16.mxu0 %v620_v42 }
  0x44   :  { %432 = vmatpush1.bf16.msra.mxu0 %v622_v43 }
  0x45   :  { %433 = vmatprep.subr.bf16.mxu0 %v623_v44 }
  0x48   :  { %434 = vmatpush1.bf16.msra.mxu0 %v625_v45 }
  0x49   :  { %435 = vmatprep.subr.bf16.mxu0 %v626_v46 }
  0x4c   :  { %436 = vmatpush1.bf16.msra.mxu0 %v628_v47 }
  0x4d   :  { %437 = vmatprep.subr.bf16.mxu0 %v629_v48 }
  0x50   :  { %438 = vmatpush1.bf16.msra.mxu0 %v631_v49 }
  0x51   :  { %439 = vmatprep.subr.bf16.mxu0 %v632_v50 }
  0x54   :  { %440 = vmatpush1.bf16.msra.mxu0 %v634_v51 }
  0xf3   :  { %v123_v52 = vpop.f32.mrb[0].mxu1 }
  0xf4   :  { %v125_v53 = vpop.f32.mrb[1].mxu1 }
  0xf5   :  { %v127_v54 = vpop.f32.mrb[2].mxu1 }
  0xf6   :  { %v128_v55 = vpop.f32.mrb[3].mxu1 }
  0xfb   :  { %v180_v60 = vpop.f32.mrb[4].mxu1 }
  0xfc   :  { %v181_v62 = vadd.f32 %v180_v60, %v123_v52  ;;  %v182_v63 = vpop.f32.mrb[5].mxu1 }
  0xfd   :  { %v183_v0 = vadd.f32 %v182_v63, %v125_v53  ;;  %v184_v1 = vpop.f32.mrb[6].mxu1 }
  0xfe   :  { %v199_v2 = vadd.f32 %v192_v59, %v181_v62  ;;  %v185_v3 = vpop.f32.mrb[7].mxu1 }
  0xff   :  { %v200_v5 = vadd.f32 %v196_v61, %v183_v0 }
 0x100   :  { %v201_v7 = vmax.f32 %v199_v2, 0.0 }
 0x101   :  { %v202_v8 = vmax.f32 %v200_v5, 0.0 }
 0x102   :  { %v203_v10 = vpack.c.bf16 %v201_v7, %v201_v7 }
 0x103   :  { %v204_v9 = vpack.c.bf16 %v202_v8, %v202_v8 }
 0x105   :  { %441 = vmatprep.mubr.bf16.mxu0 %v204_v9 }
 0x106   :  { %442 = vmatmul.mubr.bf16.vlgmr.msra.gmra.mrb[0].mxu0 %v203_v10 }
 0x1d9   :  { %v443_v16 = vpop.f32.mrb[0].mxu0 }
 0x1da   :  { %v444_v17 = vadd.f32 %v443_v16, %v242_v14  ;;  %v445_v18 = vpop.f32.mrb[1].mxu0 }
 0x1db   :  { %v446_v19 = vadd.f32 %v445_v18, %v246_v15  ;;  %v447_v20 = vpop.f32.mrb[2].mxu0 }
 0x1dc   :  { %v450_v21 = vmax.f32 %v444_v17, 0.0  ;;  %v448_v22 = vpop.f32.mrb[3].mxu0 }
 0x1dd   :  { %v451_v23 = vmax.f32 %v446_v19, 0.0 }
 0x1de   :  { %v453_v25 = vpack.c.bf16 %v450_v21, %v450_v21 }
 0x1df   :  { %v454_v24 = vpack.c.bf16 %v451_v23, %v451_v23 }
 0x1e1   :  { %482 = vmatprep.subr.bf16.mxu1 %v454_v24 }
 0x1e2   :  { %483 = vmatpush1.bf16.xpose.msra.mxu1 %v453_v25 }
 0x1e9   :  { %515 = vmatmul.mubr.bf16.vlgmr.msra.gmra.mrb[8].mxu1 %v472_v26 }
 0x2bc   :  { %v516_v28 = vpop.f32.mrb[8].mxu1 }
 0x2bd   :  { %v517_v29 = vadd.f32 %v516_v28, %v456_v27  ;;  %v518_v30 = vpop.f32.mrb[9].mxu1 }
 0x2be   :  { %v519_v31 = vpop.f32.mrb[10].mxu1 }
 0x2bf   :  { %v520_v32 = vpop.f32.mrb[11].mxu1  ;;  %523 = vst.msk [vmem:[#allocation6] sm:$0x1] %vm522_vm4, %v517_v29 }
 0x2c0   :  { %668 = shalt.err (!%p665_p12)
}
 0x2c1   :  { %s669_s15 = scalar_lea.hbm %s807_s9, 16 }
 0x2c2   :  { %p670_p13 = scmp.ne.s32.totalorder %s807_s9, %s669_s15  ;;  %p673_p0 = scmp.lt.u32.totalorder %s669_s15, %s807_s9 }
 0x2c4   :  { %p675_p1 = pnand %p673_p0, %p670_p13 }
 0x2c6   :  { %678 = shalt.err (!%p675_p1)
}
 0x2c7   :  { %533 = dma.vmem_to_hbm [thread:$0]  %s531_s11, 16, %s807_s9, [#allocation5]  }
 0x2c8   :  { %681 = dma.done.wait [#allocation5], 16  }
 0x2c9   :  { %682 = vsyncadd [#allocation5], 4294967280 }
 0x2ca   :  { %537 = vsyncpa [#allocation4], 1 }
 0x2cb   :  { %538 = vsyncpa [#allocation5], 1 }

</bundles_post_ra>
